<compile_context>
chip_gen: v7x
topology: tpu7x:2x2x1
jax: 0.10.0
libtpu: 0.0.40
codegen_flags: <defaults>
</compile_context>

<pallas_src>
import functools

import jax
import jax.numpy as jnp
from jax.experimental import pallas as pl
from jax.experimental.pallas import tpu as pltpu

EPS = 1e-9


def _round_up(x, m):
    return ((x + m - 1) // m) * m


def _divdis_kernel(lab_ref, tgt_ref, unlab_ref, out_ref, *,
                   heads, u_heads, m_idx, task_scale, rep_scale,
                   tb, tbu, n_labeled, n_unlabeled):
    step = pl.program_id(0)

    @pl.when(step == 0)
    def _():
        out_ref[...] = jnp.zeros_like(out_ref)

    c = lab_ref.shape[-1]

    # ---------------- task loss: sum of per-row CE over all heads -------------
    tgt = tgt_ref[...]                                            # [TB, 1] int32
    iota_c = jax.lax.broadcasted_iota(jnp.int32, (tb, c), 1)      # [TB, C]
    onehot_mask = iota_c == tgt                                   # [TB, C]
    row_lab = step * tb + jax.lax.broadcasted_iota(jnp.int32, (tb, 1), 0)
    valid_lab = (row_lab < n_labeled).astype(jnp.float32)         # [TB, 1]

    ce_sum = jnp.zeros((1, 1), dtype=jnp.float32)
    for h in range(heads):                                        # H is small; unrolled
        lg = lab_ref[h].astype(jnp.float32)                       # [TB, C]
        mx = jnp.max(lg, axis=-1, keepdims=True)                  # [TB, 1]
        lse = jnp.log(jnp.sum(jnp.exp(lg - mx), axis=-1,
                              keepdims=True)) + mx                # [TB, 1]
        tgt_logit = jnp.sum(jnp.where(onehot_mask, lg, 0.0),
                            axis=-1, keepdims=True)               # [TB, 1]
        ce = (lse - tgt_logit) * valid_lab                        # [TB, 1]
        ce_sum = ce_sum + jnp.sum(ce, axis=0, keepdims=True)      # [1, 1]
    task_contrib = ce_sum * task_scale

    # ---------------- A2D repulsion: sum over valid rows, non-m heads ---------
    row_unlab = step * tbu + jax.lax.broadcasted_iota(jnp.int32, (tbu, 1), 0)
    valid_unlab = (row_unlab < n_unlabeled).astype(jnp.float32)   # [TBu, 1]
    iota_cu = jax.lax.broadcasted_iota(jnp.int32, (tbu, c), 1)    # [TBu, C]

    # Only the m-head needs a softmax-style normalization, and only at gathered
    # positions: keep the un-normalized exp tile and a per-row reciprocal of its
    # sum ([TBu, 1] divide) instead of normalizing the full [TBu, C] tile.
    lg_m = unlab_ref[m_idx].astype(jnp.float32)                   # [TBu, C]
    mx_m = jnp.max(lg_m, axis=-1, keepdims=True)
    e_m = jnp.exp(lg_m - mx_m)                                    # [TBu, C]
    inv_sum_m = 1.0 / jnp.sum(e_m, axis=-1, keepdims=True)        # [TBu, 1]

    al_sum = jnp.zeros((1, 1), dtype=jnp.float32)
    for i in range(u_heads):
        if i == m_idx:
            continue
        lg = unlab_ref[i].astype(jnp.float32)                     # [TBu, C]
        mx = jnp.max(lg, axis=-1, keepdims=True)                  # [TBu, 1]
        s = jnp.sum(jnp.exp(lg - mx), axis=-1, keepdims=True)     # [TBu, 1]
        p1 = 1.0 / s                                              # max softmax prob
        # first-occurrence argmax on the raw logits (softmax-invariant, keeps ties)
        idx = jnp.min(jnp.where(lg >= mx, iota_cu, c),
                      axis=-1, keepdims=True)                     # [TBu, 1]
        p2 = jnp.sum(jnp.where(iota_cu == idx, e_m, 0.0),
                     axis=-1, keepdims=True) * inv_sum_m          # [TBu, 1]
        al = -jnp.log(p1 * (1.0 - p2) + p2 * (1.0 - p1) + EPS)    # [TBu, 1]
        al_sum = al_sum + jnp.sum(al * valid_unlab, axis=0, keepdims=True)
    rep_contrib = al_sum * rep_scale

    out_ref[...] += task_contrib + rep_contrib


def divdis_loss_pallas(labeled_logits, targets, unlabeled_logits, *,
                       weight=0.5, manual_lambda=1.0, m_idx=0,
                       target_step_bytes=4 * 1024 * 1024):
    """labeled_logits: [H,B,C], targets: [B] int, unlabeled_logits: [Hu,Bu,C]."""
    heads, n_lab, c = labeled_logits.shape
    u_heads, n_unlab, cu = unlabeled_logits.shape
    assert c == cu, "labeled / unlabeled class dims must match"
    assert u_heads >= 2, "A2D repulsion needs at least 2 heads"

    # --- choose a batch-tiled grid; per-step bytes sized for the smallest
    # scoped-VMEM budget (v5e 16 MiB default, v7x 64 MiB physical), x2 buffers.
    itemsize = jnp.dtype(labeled_logits.dtype).itemsize
    bytes_lab_row = heads * c * itemsize + 4                  # logits + int32 target
    bytes_unlab_row = u_heads * c * jnp.dtype(unlabeled_logits.dtype).itemsize
    total_bytes = n_lab * bytes_lab_row + n_unlab * bytes_unlab_row
    num_steps = max(1, pl.cdiv(total_bytes, target_step_bytes))
    num_steps = min(num_steps, max(pl.cdiv(n_lab, 8), pl.cdiv(n_unlab, 8)))
    tb = _round_up(pl.cdiv(n_lab, num_steps), 8)
    tbu = _round_up(pl.cdiv(n_unlab, num_steps), 8)

    # --- pad batch dims to num_steps * tile (padded rows masked in-kernel);
    # skip the pad (and its HBM copy) when the shape already matches.
    def pad_batch(x, axis, new_size):
        if x.shape[axis] == new_size:
            return x
        pad = [(0, 0)] * x.ndim
        pad[axis] = (0, new_size - x.shape[axis])
        return jnp.pad(x, pad)

    lab_p = pad_batch(labeled_logits, 1, num_steps * tb)          # native dtype
    unlab_p = pad_batch(unlabeled_logits, 1, num_steps * tbu)     # native dtype
    tgt_p = pad_batch(targets.astype(jnp.int32), 0, num_steps * tb)[:, None]

    kernel = functools.partial(
        _divdis_kernel,
        heads=heads, u_heads=u_heads, m_idx=int(m_idx),
        task_scale=float((1.0 - weight) / (heads * n_lab)),
        rep_scale=float(manual_lambda * weight / ((u_heads - 1) * n_unlab)),
        tb=tb, tbu=tbu, n_labeled=n_lab, n_unlabeled=n_unlab)

    out = pl.pallas_call(
        kernel,
        out_shape=jax.ShapeDtypeStruct((1, 1), jnp.float32),
        grid=(num_steps,),
        in_specs=[
            pl.BlockSpec((heads, tb, c), lambda i: (0, i, 0)),
            pl.BlockSpec((tb, 1), lambda i: (i, 0)),
            pl.BlockSpec((u_heads, tbu, c), lambda i: (0, i, 0)),
        ],
        out_specs=pl.BlockSpec((1, 1), lambda i: (0, 0)),
        compiler_params=pltpu.CompilerParams(
            dimension_semantics=("arbitrary",)),
    )(lab_p, tgt_p, unlab_p)
    return out[0, 0]


def _reference_jax(labeled_logits, targets, unlabeled_logits, *,
                   weight, manual_lambda, m_idx):
    """Pure-JAX reference mirroring the PyTorch forward (for validation)."""
    lab = labeled_logits.astype(jnp.float32)
    unlab = unlabeled_logits.astype(jnp.float32)
    # task loss
    logp = jax.nn.log_softmax(lab, axis=-1)                       # [H,B,C]
    ce = -jnp.take_along_axis(logp, targets[None, :, None], axis=-1)[..., 0]
    task = jnp.mean(jnp.mean(ce, axis=-1))
    # a2d
    probs = jax.nn.softmax(unlab, axis=-1)                        # [Hu,Bu,C]
    pm = probs[m_idx]
    losses = []
    for i in range(unlab.shape[0]):
        if i == m_idx:
            continue
        p1 = probs[i].max(-1)
        idx = probs[i].argmax(-1)
        p2 = jnp.take_along_axis(pm, idx[:, None], axis=-1)[:, 0]
        losses.append(jnp.mean(-jnp.log(p1 * (1 - p2) + p2 * (1 - p1) + EPS)))
    rep = jnp.mean(jnp.stack(losses))
    return (1.0 - weight) * task + manual_lambda * weight * rep


if __name__ == "__main__":
    H, B, C = 3, 24, 4       # heads, labeled batch, classes
    Hu, Bu = 3, 16           # unlabeled heads / batch

    key = jax.random.PRNGKey(0)
    k_lab, k_unlab, k_tgt, k_m = jax.random.split(key, 4)
    labeled = jax.random.normal(k_lab, (H, B, C), dtype=jnp.float32)
    unlabeled = jax.random.normal(k_unlab, (Hu, Bu, C), dtype=jnp.float32)
    targets = jax.random.randint(k_tgt, (B,), 0, C, dtype=jnp.int32)
    # TODO(synk): torch.randint head selection is host randomness; made deterministic here.
    m_idx = int(jax.random.randint(k_m, (), 0, Hu))

    weight, manual_lambda = 0.5, 1.0

    ref = _reference_jax(labeled, targets, unlabeled,
                         weight=weight, manual_lambda=manual_lambda,
                         m_idx=m_idx)

    # Default (single-step) path.
    total = divdis_loss_pallas(labeled, targets, unlabeled,
                               weight=weight, manual_lambda=manual_lambda,
                               m_idx=m_idx)
    total = jax.block_until_ready(total)
    assert jnp.allclose(total, ref, rtol=1e-5, atol=1e-5), (total, ref)

    # Forced multi-step path (exercises the grid accumulator + padding masks).
    total_multi = divdis_loss_pallas(labeled, targets, unlabeled,
                                     weight=weight, manual_lambda=manual_lambda,
                                     m_idx=m_idx, target_step_bytes=1024)
    total_multi = jax.block_until_ready(total_multi)
    assert jnp.allclose(total_multi, ref, rtol=1e-5, atol=1e-5), (total_multi, ref)

    print("KERNEL_OK")
</pallas_src>

<mosaic_0001>
module attributes {stable_mosaic.version = 11 : i64} {
  func.func @_divdis_kernel(%arg0: i32, %arg1: memref<3x24x4xf32, #tpu.memory_space<vmem>>, %arg2: memref<24x1xi32, #tpu.memory_space<vmem>>, %arg3: memref<3x16x4xf32, #tpu.memory_space<vmem>>, %arg4: memref<1x1xf32, #tpu.memory_space<vmem>>) attributes {dimension_semantics = [#tpu.dimension_semantics<arbitrary>], iteration_bounds = array<i64: 1>, scalar_prefetch = 0 : i64, scratch_operands = 0 : i64, tpu.core_type = #tpu.core_type<tc>, window_params = [{transform_indices = @transform_0, window_bounds = array<i64: 3, 24, 4>}, {transform_indices = @transform_1, window_bounds = array<i64: 24, 1>}, {transform_indices = @transform_2, window_bounds = array<i64: 3, 16, 4>}, {pipeline_mode = #tpu.pipeline_mode<synchronous>, transform_indices = @transform_3, window_bounds = array<i64: 1, 1>}]} {
    %c0_i32 = arith.constant 0 : i32
    %0 = arith.cmpi eq, %arg0, %c0_i32 : i32
    %1 = arith.extui %0 : i1 to i32
    %c0_i32_0 = arith.constant 0 : i32
    %2 = arith.cmpi ne, %1, %c0_i32_0 : i32
    scf.if %2 {
      %cst_68 = arith.constant 0.000000e+00 : f32
      %185 = vector.broadcast %cst_68 : f32 to vector<1x1xf32>
      %c0_69 = arith.constant 0 : index
      %c0_70 = arith.constant 0 : index
      %186 = vector.load %arg4[%c0_69, %c0_70] : memref<1x1xf32, #tpu.memory_space<vmem>>, vector<1x1xf32>
      tpu.vector_store %arg4[%c0_69, %c0_70], %185 {strides = array<i32>} : memref<1x1xf32, #tpu.memory_space<vmem>>, vector<1x1xf32>,
    } else {
    }
    %c0 = arith.constant 0 : index
    %c0_1 = arith.constant 0 : index
    %3 = vector.load %arg2[%c0, %c0_1] : memref<24x1xi32, #tpu.memory_space<vmem>>, vector<24x1xi32>
    %4 = tpu.iota {dimensions = array<i32: 1>} : vector<24x4xi32>
    %5 = vector.broadcast %3 : vector<24x1xi32> to vector<24x4xi32>
    %6 = arith.cmpi eq, %4, %5 : vector<24x4xi32>
    %c24_i32 = arith.constant 24 : i32
    %7 = arith.muli %arg0, %c24_i32 : i32
    %8 = tpu.iota {dimensions = array<i32: 0>} : vector<24x1xi32>
    %9 = vector.broadcast %7 : i32 to vector<24x1xi32>
    %10 = arith.addi %9, %8 : vector<24x1xi32>
    %c24_i32_2 = arith.constant 24 : i32
    %11 = vector.broadcast %c24_i32_2 : i32 to vector<24x1xi32>
    %12 = arith.cmpi slt, %10, %11 : vector<24x1xi32>
    %13 = arith.extui %12 : vector<24x1xi1> to vector<24x1xi32>
    %14 = arith.sitofp %13 : vector<24x1xi32> to vector<24x1xf32>
    %cst = arith.constant 0.000000e+00 : f32
    %15 = vector.broadcast %cst : f32 to vector<1x1xf32>
    %c0_3 = arith.constant 0 : index
    %c0_4 = arith.constant 0 : index
    %c0_5 = arith.constant 0 : index
    %16 = vector.load %arg1[%c0_3, %c0_4, %c0_5] : memref<3x24x4xf32, #tpu.memory_space<vmem>>, vector<1x24x4xf32>
    %17 = vector.shape_cast %16 : vector<1x24x4xf32> to vector<24x4xf32>
    %cst_6 = arith.constant dense<0xFF800000> : vector<24xf32>
    %18 = vector.multi_reduction <maximumf>, %17, %cst_6 [1] : vector<24x4xf32> to vector<24xf32>
    %19 = vector.shape_cast %18 : vector<24xf32> to vector<24x1xf32>
    %20 = vector.broadcast %19 : vector<24x1xf32> to vector<24x4xf32>
    %21 = arith.subf %17, %20 : vector<24x4xf32>
    %22 = math.exp %21 : vector<24x4xf32>
    %cst_7 = arith.constant dense<0.000000e+00> : vector<24xf32>
    %23 = vector.multi_reduction <add>, %22, %cst_7 [1] : vector<24x4xf32> to vector<24xf32>
    %24 = vector.shape_cast %23 : vector<24xf32> to vector<24x1xf32>
    %25 = math.log %24 : vector<24x1xf32>
    %26 = arith.addf %25, %19 : vector<24x1xf32>
    %cst_8 = arith.constant 0.000000e+00 : f32
    %27 = vector.broadcast %cst_8 : f32 to vector<24x4xf32>
    %28 = arith.select %6, %17, %27 : vector<24x4xi1>, vector<24x4xf32>
    %cst_9 = arith.constant dense<0.000000e+00> : vector<24xf32>
    %29 = vector.multi_reduction <add>, %28, %cst_9 [1] : vector<24x4xf32> to vector<24xf32>
    %30 = vector.shape_cast %29 : vector<24xf32> to vector<24x1xf32>
    %31 = arith.subf %26, %30 : vector<24x1xf32>
    %32 = arith.mulf %31, %14 : vector<24x1xf32>
    %cst_10 = arith.constant dense<0.000000e+00> : vector<1xf32>
    %33 = vector.multi_reduction <add>, %32, %cst_10 [0] : vector<24x1xf32> to vector<1xf32>
    %34 = vector.shape_cast %33 : vector<1xf32> to vector<1x1xf32>
    %35 = arith.addf %15, %34 : vector<1x1xf32>
    %c1 = arith.constant 1 : index
    %c0_11 = arith.constant 0 : index
    %c0_12 = arith.constant 0 : index
    %36 = vector.load %arg1[%c1, %c0_11, %c0_12] : memref<3x24x4xf32, #tpu.memory_space<vmem>>, vector<1x24x4xf32>
    %37 = vector.shape_cast %36 : vector<1x24x4xf32> to vector<24x4xf32>
    %cst_13 = arith.constant dense<0xFF800000> : vector<24xf32>
    %38 = vector.multi_reduction <maximumf>, %37, %cst_13 [1] : vector<24x4xf32> to vector<24xf32>
    %39 = vector.shape_cast %38 : vector<24xf32> to vector<24x1xf32>
    %40 = vector.broadcast %39 : vector<24x1xf32> to vector<24x4xf32>
    %41 = arith.subf %37, %40 : vector<24x4xf32>
    %42 = math.exp %41 : vector<24x4xf32>
    %cst_14 = arith.constant dense<0.000000e+00> : vector<24xf32>
    %43 = vector.multi_reduction <add>, %42, %cst_14 [1] : vector<24x4xf32> to vector<24xf32>
    %44 = vector.shape_cast %43 : vector<24xf32> to vector<24x1xf32>
    %45 = math.log %44 : vector<24x1xf32>
    %46 = arith.addf %45, %39 : vector<24x1xf32>
    %cst_15 = arith.constant 0.000000e+00 : f32
    %47 = vector.broadcast %cst_15 : f32 to vector<24x4xf32>
    %48 = arith.select %6, %37, %47 : vector<24x4xi1>, vector<24x4xf32>
    %cst_16 = arith.constant dense<0.000000e+00> : vector<24xf32>
    %49 = vector.multi_reduction <add>, %48, %cst_16 [1] : vector<24x4xf32> to vector<24xf32>
    %50 = vector.shape_cast %49 : vector<24xf32> to vector<24x1xf32>
    %51 = arith.subf %46, %50 : vector<24x1xf32>
    %52 = arith.mulf %51, %14 : vector<24x1xf32>
    %cst_17 = arith.constant dense<0.000000e+00> : vector<1xf32>
    %53 = vector.multi_reduction <add>, %52, %cst_17 [0] : vector<24x1xf32> to vector<1xf32>
    %54 = vector.shape_cast %53 : vector<1xf32> to vector<1x1xf32>
    %55 = arith.addf %35, %54 : vector<1x1xf32>
    %c2 = arith.constant 2 : index
    %c0_18 = arith.constant 0 : index
    %c0_19 = arith.constant 0 : index
    %56 = vector.load %arg1[%c2, %c0_18, %c0_19] : memref<3x24x4xf32, #tpu.memory_space<vmem>>, vector<1x24x4xf32>
    %57 = vector.shape_cast %56 : vector<1x24x4xf32> to vector<24x4xf32>
    %cst_20 = arith.constant dense<0xFF800000> : vector<24xf32>
    %58 = vector.multi_reduction <maximumf>, %57, %cst_20 [1] : vector<24x4xf32> to vector<24xf32>
    %59 = vector.shape_cast %58 : vector<24xf32> to vector<24x1xf32>
    %60 = vector.broadcast %59 : vector<24x1xf32> to vector<24x4xf32>
    %61 = arith.subf %57, %60 : vector<24x4xf32>
    %62 = math.exp %61 : vector<24x4xf32>
    %cst_21 = arith.constant dense<0.000000e+00> : vector<24xf32>
    %63 = vector.multi_reduction <add>, %62, %cst_21 [1] : vector<24x4xf32> to vector<24xf32>
    %64 = vector.shape_cast %63 : vector<24xf32> to vector<24x1xf32>
    %65 = math.log %64 : vector<24x1xf32>
    %66 = arith.addf %65, %59 : vector<24x1xf32>
    %cst_22 = arith.constant 0.000000e+00 : f32
    %67 = vector.broadcast %cst_22 : f32 to vector<24x4xf32>
    %68 = arith.select %6, %57, %67 : vector<24x4xi1>, vector<24x4xf32>
    %cst_23 = arith.constant dense<0.000000e+00> : vector<24xf32>
    %69 = vector.multi_reduction <add>, %68, %cst_23 [1] : vector<24x4xf32> to vector<24xf32>
    %70 = vector.shape_cast %69 : vector<24xf32> to vector<24x1xf32>
    %71 = arith.subf %66, %70 : vector<24x1xf32>
    %72 = arith.mulf %71, %14 : vector<24x1xf32>
    %cst_24 = arith.constant dense<0.000000e+00> : vector<1xf32>
    %73 = vector.multi_reduction <add>, %72, %cst_24 [0] : vector<24x1xf32> to vector<1xf32>
    %74 = vector.shape_cast %73 : vector<1xf32> to vector<1x1xf32>
    %75 = arith.addf %55, %74 : vector<1x1xf32>
    %cst_25 = arith.constant 0.0069444445 : f32
    %76 = vector.broadcast %cst_25 : f32 to vector<1x1xf32>
    %77 = arith.mulf %75, %76 : vector<1x1xf32>
    %c16_i32 = arith.constant 16 : i32
    %78 = arith.muli %arg0, %c16_i32 : i32
    %79 = tpu.iota {dimensions = array<i32: 0>} : vector<16x1xi32>
    %80 = vector.broadcast %78 : i32 to vector<16x1xi32>
    %81 = arith.addi %80, %79 : vector<16x1xi32>
    %c16_i32_26 = arith.constant 16 : i32
    %82 = vector.broadcast %c16_i32_26 : i32 to vector<16x1xi32>
    %83 = arith.cmpi slt, %81, %82 : vector<16x1xi32>
    %84 = arith.extui %83 : vector<16x1xi1> to vector<16x1xi32>
    %85 = arith.sitofp %84 : vector<16x1xi32> to vector<16x1xf32>
    %86 = tpu.iota {dimensions = array<i32: 1>} : vector<16x4xi32>
    %c0_27 = arith.constant 0 : index
    %c0_28 = arith.constant 0 : index
    %c0_29 = arith.constant 0 : index
    %87 = vector.load %arg3[%c0_27, %c0_28, %c0_29] : memref<3x16x4xf32, #tpu.memory_space<vmem>>, vector<1x16x4xf32>
    %88 = vector.shape_cast %87 : vector<1x16x4xf32> to vector<16x4xf32>
    %cst_30 = arith.constant dense<0xFF800000> : vector<16xf32>
    %89 = vector.multi_reduction <maximumf>, %88, %cst_30 [1] : vector<16x4xf32> to vector<16xf32>
    %90 = vector.shape_cast %89 : vector<16xf32> to vector<16x1xf32>
    %91 = vector.broadcast %90 : vector<16x1xf32> to vector<16x4xf32>
    %92 = arith.subf %88, %91 : vector<16x4xf32>
    %93 = math.exp %92 : vector<16x4xf32>
    %cst_31 = arith.constant dense<0.000000e+00> : vector<16xf32>
    %94 = vector.multi_reduction <add>, %93, %cst_31 [1] : vector<16x4xf32> to vector<16xf32>
    %95 = vector.shape_cast %94 : vector<16xf32> to vector<16x1xf32>
    %cst_32 = arith.constant 1.000000e+00 : f32
    %96 = vector.broadcast %cst_32 : f32 to vector<16x1xf32>
    %97 = arith.divf %96, %95 : vector<16x1xf32>
    %cst_33 = arith.constant 0.000000e+00 : f32
    %98 = vector.broadcast %cst_33 : f32 to vector<1x1xf32>
    %c1_34 = arith.constant 1 : index
    %c0_35 = arith.constant 0 : index
    %c0_36 = arith.constant 0 : index
    %99 = vector.load %arg3[%c1_34, %c0_35, %c0_36] : memref<3x16x4xf32, #tpu.memory_space<vmem>>, vector<1x16x4xf32>
    %100 = vector.shape_cast %99 : vector<1x16x4xf32> to vector<16x4xf32>
    %cst_37 = arith.constant dense<0xFF800000> : vector<16xf32>
    %101 = vector.multi_reduction <maximumf>, %100, %cst_37 [1] : vector<16x4xf32> to vector<16xf32>
    %102 = vector.shape_cast %101 : vector<16xf32> to vector<16x1xf32>
    %103 = vector.broadcast %102 : vector<16x1xf32> to vector<16x4xf32>
    %104 = arith.subf %100, %103 : vector<16x4xf32>
    %105 = math.exp %104 : vector<16x4xf32>
    %cst_38 = arith.constant dense<0.000000e+00> : vector<16xf32>
    %106 = vector.multi_reduction <add>, %105, %cst_38 [1] : vector<16x4xf32> to vector<16xf32>
    %107 = vector.shape_cast %106 : vector<16xf32> to vector<16x1xf32>
    %cst_39 = arith.constant 1.000000e+00 : f32
    %108 = vector.broadcast %cst_39 : f32 to vector<16x1xf32>
    %109 = arith.divf %108, %107 : vector<16x1xf32>
    %110 = vector.broadcast %102 : vector<16x1xf32> to vector<16x4xf32>
    %111 = arith.cmpf oge, %100, %110 : vector<16x4xf32>
    %c4_i32 = arith.constant 4 : i32
    %112 = vector.broadcast %c4_i32 : i32 to vector<16x4xi32>
    %113 = arith.select %111, %86, %112 : vector<16x4xi1>, vector<16x4xi32>
    %cst_40 = arith.constant dense<2147483647> : vector<16xi32>
    %114 = vector.multi_reduction <minsi>, %113, %cst_40 [1] : vector<16x4xi32> to vector<16xi32>
    %115 = vector.shape_cast %114 : vector<16xi32> to vector<16x1xi32>
    %116 = vector.broadcast %115 : vector<16x1xi32> to vector<16x4xi32>
    %117 = arith.cmpi eq, %86, %116 : vector<16x4xi32>
    %cst_41 = arith.constant 0.000000e+00 : f32
    %118 = vector.broadcast %cst_41 : f32 to vector<16x4xf32>
    %119 = arith.select %117, %93, %118 : vector<16x4xi1>, vector<16x4xf32>
    %cst_42 = arith.constant dense<0.000000e+00> : vector<16xf32>
    %120 = vector.multi_reduction <add>, %119, %cst_42 [1] : vector<16x4xf32> to vector<16xf32>
    %121 = vector.shape_cast %120 : vector<16xf32> to vector<16x1xf32>
    %122 = arith.mulf %121, %97 : vector<16x1xf32>
    %cst_43 = arith.constant 1.000000e+00 : f32
    %123 = vector.broadcast %cst_43 : f32 to vector<16x1xf32>
    %124 = arith.subf %123, %122 : vector<16x1xf32>
    %125 = arith.mulf %109, %124 : vector<16x1xf32>
    %cst_44 = arith.constant 1.000000e+00 : f32
    %126 = vector.broadcast %cst_44 : f32 to vector<16x1xf32>
    %127 = arith.subf %126, %109 : vector<16x1xf32>
    %128 = arith.mulf %122, %127 : vector<16x1xf32>
    %129 = arith.addf %125, %128 : vector<16x1xf32>
    %cst_45 = arith.constant 9.99999971E-10 : f32
    %130 = vector.broadcast %cst_45 : f32 to vector<16x1xf32>
    %131 = arith.addf %129, %130 : vector<16x1xf32>
    %132 = math.log %131 : vector<16x1xf32>
    %cst_46 = arith.constant 0.000000e+00 : f32
    %133 = vector.broadcast %cst_46 : f32 to vector<16x1xf32>
    %134 = arith.subf %133, %132 : vector<16x1xf32>
    %135 = arith.mulf %134, %85 : vector<16x1xf32>
    %cst_47 = arith.constant dense<0.000000e+00> : vector<1xf32>
    %136 = vector.multi_reduction <add>, %135, %cst_47 [0] : vector<16x1xf32> to vector<1xf32>
    %137 = vector.shape_cast %136 : vector<1xf32> to vector<1x1xf32>
    %138 = arith.addf %98, %137 : vector<1x1xf32>
    %c2_48 = arith.constant 2 : index
    %c0_49 = arith.constant 0 : index
    %c0_50 = arith.constant 0 : index
    %139 = vector.load %arg3[%c2_48, %c0_49, %c0_50] : memref<3x16x4xf32, #tpu.memory_space<vmem>>, vector<1x16x4xf32>
    %140 = vector.shape_cast %139 : vector<1x16x4xf32> to vector<16x4xf32>
    %cst_51 = arith.constant dense<0xFF800000> : vector<16xf32>
    %141 = vector.multi_reduction <maximumf>, %140, %cst_51 [1] : vector<16x4xf32> to vector<16xf32>
    %142 = vector.shape_cast %141 : vector<16xf32> to vector<16x1xf32>
    %143 = vector.broadcast %142 : vector<16x1xf32> to vector<16x4xf32>
    %144 = arith.subf %140, %143 : vector<16x4xf32>
    %145 = math.exp %144 : vector<16x4xf32>
    %cst_52 = arith.constant dense<0.000000e+00> : vector<16xf32>
    %146 = vector.multi_reduction <add>, %145, %cst_52 [1] : vector<16x4xf32> to vector<16xf32>
    %147 = vector.shape_cast %146 : vector<16xf32> to vector<16x1xf32>
    %cst_53 = arith.constant 1.000000e+00 : f32
    %148 = vector.broadcast %cst_53 : f32 to vector<16x1xf32>
    %149 = arith.divf %148, %147 : vector<16x1xf32>
    %150 = vector.broadcast %142 : vector<16x1xf32> to vector<16x4xf32>
    %151 = arith.cmpf oge, %140, %150 : vector<16x4xf32>
    %c4_i32_54 = arith.constant 4 : i32
    %152 = vector.broadcast %c4_i32_54 : i32 to vector<16x4xi32>
    %153 = arith.select %151, %86, %152 : vector<16x4xi1>, vector<16x4xi32>
    %cst_55 = arith.constant dense<2147483647> : vector<16xi32>
    %154 = vector.multi_reduction <minsi>, %153, %cst_55 [1] : vector<16x4xi32> to vector<16xi32>
    %155 = vector.shape_cast %154 : vector<16xi32> to vector<16x1xi32>
    %156 = vector.broadcast %155 : vector<16x1xi32> to vector<16x4xi32>
    %157 = arith.cmpi eq, %86, %156 : vector<16x4xi32>
    %cst_56 = arith.constant 0.000000e+00 : f32
    %158 = vector.broadcast %cst_56 : f32 to vector<16x4xf32>
    %159 = arith.select %157, %93, %158 : vector<16x4xi1>, vector<16x4xf32>
    %cst_57 = arith.constant dense<0.000000e+00> : vector<16xf32>
    %160 = vector.multi_reduction <add>, %159, %cst_57 [1] : vector<16x4xf32> to vector<16xf32>
    %161 = vector.shape_cast %160 : vector<16xf32> to vector<16x1xf32>
    %162 = arith.mulf %161, %97 : vector<16x1xf32>
    %cst_58 = arith.constant 1.000000e+00 : f32
    %163 = vector.broadcast %cst_58 : f32 to vector<16x1xf32>
    %164 = arith.subf %163, %162 : vector<16x1xf32>
    %165 = arith.mulf %149, %164 : vector<16x1xf32>
    %cst_59 = arith.constant 1.000000e+00 : f32
    %166 = vector.broadcast %cst_59 : f32 to vector<16x1xf32>
    %167 = arith.subf %166, %149 : vector<16x1xf32>
    %168 = arith.mulf %162, %167 : vector<16x1xf32>
    %169 = arith.addf %165, %168 : vector<16x1xf32>
    %cst_60 = arith.constant 9.99999971E-10 : f32
    %170 = vector.broadcast %cst_60 : f32 to vector<16x1xf32>
    %171 = arith.addf %169, %170 : vector<16x1xf32>
    %172 = math.log %171 : vector<16x1xf32>
    %cst_61 = arith.constant 0.000000e+00 : f32
    %173 = vector.broadcast %cst_61 : f32 to vector<16x1xf32>
    %174 = arith.subf %173, %172 : vector<16x1xf32>
    %175 = arith.mulf %174, %85 : vector<16x1xf32>
    %cst_62 = arith.constant dense<0.000000e+00> : vector<1xf32>
    %176 = vector.multi_reduction <add>, %175, %cst_62 [0] : vector<16x1xf32> to vector<1xf32>
    %177 = vector.shape_cast %176 : vector<1xf32> to vector<1x1xf32>
    %178 = arith.addf %138, %177 : vector<1x1xf32>
    %cst_63 = arith.constant 1.562500e-02 : f32
    %179 = vector.broadcast %cst_63 : f32 to vector<1x1xf32>
    %180 = arith.mulf %178, %179 : vector<1x1xf32>
    %c0_64 = arith.constant 0 : index
    %c0_65 = arith.constant 0 : index
    %181 = vector.load %arg4[%c0_64, %c0_65] : memref<1x1xf32, #tpu.memory_space<vmem>>, vector<1x1xf32>
    %182 = arith.addf %77, %180 : vector<1x1xf32>
    %183 = arith.addf %181, %182 : vector<1x1xf32>
    %c0_66 = arith.constant 0 : index
    %c0_67 = arith.constant 0 : index
    %184 = vector.load %arg4[%c0_66, %c0_67] : memref<1x1xf32, #tpu.memory_space<vmem>>, vector<1x1xf32>
    tpu.vector_store %arg4[%c0_66, %c0_67], %183 {strides = array<i32>} : memref<1x1xf32, #tpu.memory_space<vmem>>, vector<1x1xf32>,
    return
  }
  func.func @transform_0(%arg0: i32) -> (i32, i32, i32) {
    %c0_i32 = arith.constant 0 : i32
    %c0_i32_0 = arith.constant 0 : i32
    %c0_i32_1 = arith.constant 0 : i32
    return %c0_i32, %arg0, %c0_i32_0 : i32, i32, i32
  }
  func.func @transform_1(%arg0: i32) -> (i32, i32) {
    %c0_i32 = arith.constant 0 : i32
    %c0_i32_0 = arith.constant 0 : i32
    return %arg0, %c0_i32 : i32, i32
  }
  func.func @transform_2(%arg0: i32) -> (i32, i32, i32) {
    %c0_i32 = arith.constant 0 : i32
    %c0_i32_0 = arith.constant 0 : i32
    %c0_i32_1 = arith.constant 0 : i32
    return %c0_i32, %arg0, %c0_i32_0 : i32, i32, i32
  }
  func.func @transform_3(%arg0: i32) -> (i32, i32) {
    %c0_i32 = arith.constant 0 : i32
    %c0_i32_0 = arith.constant 0 : i32
    %c0_i32_1 = arith.constant 0 : i32
    return %c0_i32, %c0_i32_0 : i32, i32
  }
}

</mosaic_0001>

<bundles_post_ra>
// kernel: tpu_custom_call.1
= control target key start
LH: loop header
LB: loop body
LE: loop exit
PB: predicated region body
PF: predicated region fallthrough
CT: control target
= control target key end

     0   :  { %vm59_vm0 = vcmask 31744   ;;  %s947_s0 = inlined_call_operand.vmem [shape: f32[3,24,4], index: 0, kind: input, shape index: {}]   ;;  %s948_s1 = inlined_call_operand.vmem [shape: s32[24,1], index: 1, kind: input, shape index: {}]   ;;  %s949_s2 = inlined_call_operand.vmem [shape: f32[3,16,4], index: 2, kind: input, shape index: {}]   ;;  %s950_s3 = inlined_call_operand.hbm [shape: f32[1,1], index: 3, kind: output, shape index: {}]  }
   0x1   :  { %v643_v0 = vld [vmem:[%s949_s2 + $0x10] sm:$0xff]  ;;  %v648_v1 = vld [vmem:[%s949_s2 + $0x20] sm:$0xff]  ;;  %v653_v2 = vld [vmem:[%s949_s2 + $0x18] sm:$0xff] }
   0x2   :  { %v295_v3 = vsel %vm59_vm0, %v643_v0, -inf  ;;  %v394_v4 = vsel %vm59_vm0, %v648_v1, -inf  ;;  %v662_v5 = vld [vmem:[%s949_s2 + $0x28] sm:$0xff] }
   0x3   :  { %8 = vsyncpa [#allocation3], 0  ;;  %296 = vmax.xlane.f32.xlu0 %v295_v3  ;;  %395 = vmax.xlane.f32.xlu1 %v394_v4  ;;  %v298_v6 = vsel %vm59_vm0, %v653_v2, -inf  ;;  %v397_v7 = vsel %vm59_vm0, %v662_v5, -inf  ;;  %v617_v8 = vmov 0   ;;  %v24_v9 = vlaneseq  ;;  %v694_v26 = vld [vmem:[%s949_s2 + $0x8] sm:$0xff] }
   0x4   :  { %523 = vset.pattern.permute.xlu1 %v617_v8  ;;  %524 = vset.pattern.permute.xlu0 %v617_v8  ;;  %v699_v27 = vld [vmem:[%s949_s2] sm:$0xff]  ;;  %v273_v29 = vsel %vm59_vm0, %v694_v26, -inf  ;;  %v710_v31 = vld [vmem:[%s947_s0 + $0x8] sm:$0xff]  ;;  %v732_v37 = vld [vmem:[%s947_s0 + $0x18] sm:$0xff] }
   0x5   :  { %v668_v10 = vand.u32 127, %v24_v9  ;;  %v270_v30 = vsel %vm59_vm0, %v699_v27, -inf  ;;  %v715_v32 = vld [vmem:[%s947_s0] sm:$0xff]  ;;  %v63_v33 = vsel %vm59_vm0, %v710_v31, -inf  ;;  %v127_v40 = vsel %vm59_vm0, %v732_v37, -inf  ;;  %v742_v41 = vld [vmem:[%s947_s0 + $0x28] sm:$0xff] }
   0x6   :  { %v60_v34 = vsel %vm59_vm0, %v715_v32, -inf  ;;  %v727_v36 = vld [vmem:[%s947_s0 + $0x20] sm:$0xff]  ;;  %v747_v42 = vld [vmem:[%s947_s0 + $0x10] sm:$0xff]  ;;  %v133_v44 = vsel %vm59_vm0, %v742_v41, -inf  ;;  %v763_v49 = vld [vmem:[%s947_s0 + $0x38] sm:$0xff] }
   0x7   :  { %299 = vmax.xlane.f32.xlu0 %v298_v6  ;;  %398 = vmax.xlane.f32.xlu1 %v397_v7  ;;  %v130_v38 = vsel %vm59_vm0, %v727_v36, -inf  ;;  %v66_v45 = vsel %vm59_vm0, %v747_v42, -inf  ;;  %v756_v46 = vld [vmem:[%s947_s0 + $0x30] sm:$0xff]  ;;  %v768_v50 = vld [vmem:[%s947_s0 + $0x40] sm:$0xff]  ;;  %v197_v51 = vsel %vm59_vm0, %v763_v49, -inf }
   0x8   :  { %v194_v48 = vsel %vm59_vm0, %v756_v46, -inf  ;;  %v200_v52 = vsel %vm59_vm0, %v768_v50, -inf  ;;  %v21_v53 = vld [vmem:[%s948_s1] sm:$0xff] }
  0x90   :  { %v670_v11 = vpop.xlane.xlu0 %296  ;;  %v672_v12 = vpop.xlane.xlu1 %395 }
  0x91   :  { %vm317_vm1 = vcmp.ge.f32.partialorder %v643_v0, %v670_v11  ;;  %vm416_vm2 = vcmp.ge.f32.partialorder %v648_v1, %v672_v12 }
  0x92   :  { %v319_v13 = vsel %vm317_vm1, %v668_v10, 4  ;;  %v418_v14 = vsel %vm416_vm2, %v668_v10, 4  ;;  %vm19_vm1 = vcmask 0  }
  0x93   :  { %v321_v15 = vsel %vm59_vm0, %v319_v13, 2147483647  ;;  %v684_v18 = vsel %vm59_vm0, %v418_v14, 2147483647  ;;  %v23_v14 = vld [vmem:[%s948_s1 + $0x10] sm:$0xff] }
  0x94   :  { %v681_v16 = vpop.xlane.xlu0 %299  ;;  %v323_v17 = vshra.s32 %v321_v15, 16  ;;  %v422_v19 = vshra.s32 %v684_v18, 16  ;;  %v701_v28 = vpop.xlane.xlu1 %398  ;;  %v322_v54 = vand.u32 65535, %v321_v15  ;;  %v421_v58 = vand.u32 65535, %v684_v18 }
  0x95   :  { %vm318_vm3 = vcmp.ge.f32.partialorder %v653_v2, %v681_v16  ;;  %vm417_vm4 = vcmp.ge.f32.partialorder %v662_v5, %v701_v28 }
  0x96   :  { %v320_v20 = vsel %vm318_vm3, %v668_v10, 4  ;;  %v325_v21 = vcvt.s32.f32 %v323_v17  ;;  %v424_v24 = vcvt.s32.f32 %v422_v19  ;;  %v419_v35 = vsel %vm417_vm4, %v668_v10, 4 }
  0x97   :  { %v336_v22 = vsel %vm59_vm0, %v320_v20, 2147483647  ;;  %v435_v39 = vsel %vm59_vm0, %v419_v35, 2147483647  ;;  %v324_v56 = vcvt.s32.f32 %v322_v54  ;;  %v423_v63 = vcvt.s32.f32 %v421_v58 }
  0x98   :  { %326 = vmin.xlane.f32.xlu0 %v325_v21  ;;  %v338_v23 = vshra.s32 %v336_v22, 16  ;;  %v437_v43 = vshra.s32 %v435_v39, 16  ;;  %v337_v57 = vand.u32 65535, %v336_v22  ;;  %v436_v13 = vand.u32 65535, %v435_v39 }
  0x99   :  { %v301_v22 = vsub.f32 %v643_v0, %v670_v11  ;;  %v401_v11 = vsub.f32 %v662_v5, %v701_v28 }
  0x9a   :  { %v340_v25 = vcvt.s32.f32 %v338_v23  ;;  %v439_v47 = vcvt.s32.f32 %v437_v43  ;;  %v339_v62 = vcvt.s32.f32 %v337_v57  ;;  %v438_v17 = vcvt.s32.f32 %v436_v13 }
  0x9b   :  { %v303_v23 = vmul.f32 1.442695, %v301_v22 }
  0x9c   :  { %341 = vmin.xlane.f32.xlu1 %v340_v25  ;;  %425 = vmin.xlane.f32.xlu0 %v424_v24 }
  0xa0   :  { %274 = vmax.xlane.f32.xlu1 %v273_v29  ;;  %271 = vmax.xlane.f32.xlu0 %v270_v30  ;;  %v400_v29 = vsub.f32 %v648_v1, %v672_v12 }
  0xa2   :  { %v402_v0 = vmul.f32 1.442695, %v400_v29 }
  0xa4   :  { %64 = vmax.xlane.f32.xlu1 %v63_v33  ;;  %61 = vmax.xlane.f32.xlu0 %v60_v34  ;;  %v404_v34 = vmul.f32 1.442695, %v401_v11 }
  0xa8   :  { %131 = vmax.xlane.f32.xlu1 %v130_v38  ;;  %128 = vmax.xlane.f32.xlu0 %v127_v40 }
  0xac   :  { %134 = vmax.xlane.f32.xlu1 %v133_v44  ;;  %67 = vmax.xlane.f32.xlu0 %v66_v45 }
  0xb0   :  { %440 = vmin.xlane.f32.xlu1 %v439_v47  ;;  %195 = vmax.xlane.f32.xlu0 %v194_v48 }
  0xb4   :  { %198 = vmax.xlane.f32.xlu1 %v197_v51  ;;  %201 = vmax.xlane.f32.xlu0 %v200_v52 }
  0xc5   :  { %27 = vperm.xlu1 %523, %v21_v53  }
 0x125   :  { %v777_v55 = vpop.xlane.xlu0 %326 }
 0x126   :  { %vm328_vm5 = vcmp.eq.f32.partialorder %v325_v21, %v777_v55 }
 0x127   :  { %v329_v59 = vsel %vm328_vm5, %v324_v56, inf }
 0x128   :  { %330 = vmin.xlane.f32.xlu1 %v329_v59 }
 0x129   :  { %v781_v60 = vpop.xlane.xlu1 %341  ;;  %v783_v61 = vpop.xlane.xlu0 %425 }
 0x12a   :  { %vm343_vm6 = vcmp.eq.f32.partialorder %v340_v25, %v781_v60  ;;  %vm427_vm7 = vcmp.eq.f32.partialorder %v424_v24, %v783_v61  ;;  %v302_v24 = vsub.f32 %v653_v2, %v681_v16  ;;  %v22_v25 = vld [vmem:[%s948_s1 + $0x8] sm:$0xff]  ;;  %s619_s1 = smov [#allocation2]  }
 0x12b   :  { %v344_v3 = vsel %vm343_vm6, %v339_v62, inf  ;;  %v428_v4 = vsel %vm427_vm7, %v423_v63, inf  ;;  %s502_s19 = sshll.u32 %s619_s1, 4  ;;  %s503_s19 = int_to_ptr.vmem [resolvable:$true] %s502_s19 }
 0x12c   :  { %345 = vmin.xlane.f32.xlu0 %v344_v3  ;;  %429 = vmin.xlane.f32.xlu1 %v428_v4  ;;  %v305_v30 = vmul.f32 1.442695, %v302_v24  ;;  %s593_s20 = scalar_lea.vmem %s503_s19, 16  ;;  %s597_s21 = scalar_lea.vmem %s503_s19, 32 }
 0x12d   :  { %v275_v6 = vpop.xlane.xlu1 %274  ;;  %v272_v19 = vpop.xlane.xlu0 %271  ;;  %p594_p0 = scmp.ne.s32.totalorder %s503_s19, %s593_s20  ;;  %p598_p1 = scmp.lt.s32.totalorder %s503_s19, %s503_s19 }
 0x12e   :  { %v276_v20 = vsub.f32 %v699_v27, %v272_v19  ;;  %v277_v2 = vsub.f32 %v694_v26, %v275_v6  ;;  %p599_p2 = scmp.lt.s32.totalorder %s597_s21, %s593_s20 }
 0x130   :  { %v278_v21 = vmul.f32 1.442695, %v276_v20  ;;  %v280_v39 = vmul.f32 1.442695, %v277_v2  ;;  %p600_p3 = por %p599_p2, %p598_p1 }
 0x131   :  { %v787_v7 = vpop.xlane.xlu1 %64  ;;  %v809_v27 = vpop.xlane.xlu0 %61 }
 0x132   :  { %525 = vpow2.f32 %v278_v21  ;;  %v70_v1 = vsub.f32 %v710_v31, %v787_v7  ;;  %v69_v38 = vsub.f32 %v715_v32, %v809_v27  ;;  %p601_p4 = pnand %p600_p3, %p594_p0 }
 0x133   :  { %527 = vpow2.f32 %v303_v23 }
 0x134   :  { %529 = vpow2.f32 %v305_v30  ;;  %v74_v5 = vmul.f32 1.442695, %v70_v1  ;;  %v72_v43 = vmul.f32 1.442695, %v69_v38  ;;  %v348_v1 = vcvt.f32.s32 %v781_v60 }
 0x135   :  { %v789_v8 = vpop.xlane.xlu1 %131  ;;  %531 = vpow2.f32 %v402_v0  ;;  %v820_v12 = vpop.xlane.xlu0 %128 }
 0x136   :  { %533 = vpow2.f32 %v404_v34  ;;  %v137_v26 = vsub.f32 %v727_v36, %v789_v8  ;;  %v136_v44 = vsub.f32 %v732_v37, %v820_v12  ;;  %v333_v34 = vcvt.f32.s32 %v777_v55 }
 0x137   :  { %535 = vpow2.f32 %v280_v39 }
 0x138   :  { %537 = vpow2.f32 %v74_v5  ;;  %v139_v53 = vmul.f32 1.442695, %v136_v44  ;;  %v334_v39 = vshll.u32 %v333_v34, 16  ;;  %v432_v5 = vcvt.f32.s32 %v783_v61 }
 0x139   :  { %v791_v9 = vpop.xlane.xlu1 %134  ;;  %v829_v45 = vpop.xlane.xlu0 %67  ;;  %539 = vpow2.f32 %v72_v43 }
 0x13a   :  { %v138_v48 = vsub.f32 %v742_v41, %v791_v9  ;;  %v71_v54 = vsub.f32 %v747_v42, %v829_v45 }
 0x13c   :  { %v811_v33 = vpop.eup %525  ;;  %v143_v56 = vmul.f32 1.442695, %v138_v48  ;;  %v76_v59 = vmul.f32 1.442695, %v71_v54 }
 0x13d   :  { %v796_v15 = vpop.xlane.xlu1 %440  ;;  %33 = vperm.xlu1 %523, %v23_v14   ;;  %v282_v16 = vsel %vm59_vm0, %v811_v33, 0.0  ;;  %v528_v35 = vpop.eup %527 }
 0x13e   :  { %vm442_vm8 = vcmp.eq.f32.partialorder %v439_v47, %v796_v15  ;;  %v307_v28 = vsel %vm59_vm0, %v528_v35, 0.0  ;;  %v530_v40 = vpop.eup %529  ;;  %v141_v47 = vmul.f32 1.442695, %v137_v26 }
 0x13f   :  { %v443_v18 = vsel %vm442_vm8, %v438_v17, inf  ;;  %v310_v51 = vsel %vm59_vm0, %v530_v40, 0.0  ;;  %v532_v52 = vpop.eup %531  ;;  %v349_v40 = vshll.u32 %v348_v1, 16 }
 0x140   :  { %444 = vmin.xlane.f32.xlu0 %v443_v18  ;;  %541 = vpow2.f32 %v141_v47  ;;  %v406_v57 = vsel %vm59_vm0, %v532_v52, 0.0  ;;  %v534_v58 = vpop.eup %533  ;;  %v433_v47 = vshll.u32 %v432_v5, 16 }
 0x141   :  { %543 = vpow2.f32 %v139_v53  ;;  %v837_v62 = vpop.eup %535  ;;  %v409_v63 = vsel %vm59_vm0, %v534_v58, 0.0  ;;  %v850_v29 = vpop.xlane.xlu1 %198 }
 0x142   :  { %545 = vpow2.f32 %v143_v56  ;;  %v538_v3 = vpop.eup %537  ;;  %v285_v6 = vsel %vm59_vm0, %v837_v62, 0.0 }
 0x143   :  { %547 = vpow2.f32 %v76_v59  ;;  %v540_v4 = vpop.eup %539  ;;  %v81_v13 = vsel %vm59_vm0, %v538_v3, 0.0  ;;  %v204_v3 = vsub.f32 %v763_v49, %v850_v29 }
 0x144   :  { %v78_v17 = vsel %vm59_vm0, %v540_v4, 0.0 }
 0x145   :  { %v856_v11 = vpop.permute.xlu1 %27 }
 0x146   :  { %vm35_vm13 = vcmp.eq.s32.totalorder %v668_v10, %v856_v11 }
 0x14a   :  { %v542_v14 = vpop.eup %541 }
 0x14b   :  { %v544_v18 = vpop.eup %543  ;;  %v148_v19 = vsel %vm59_vm0, %v542_v14, 0.0 }
 0x14c   :  { %v546_v20 = vpop.eup %545  ;;  %v145_v21 = vsel %vm59_vm0, %v544_v18, 0.0 }
 0x14d   :  { %v548_v22 = vpop.eup %547  ;;  %v151_v23 = vsel %vm59_vm0, %v546_v20, 0.0 }
 0x14e   :  { %v84_v24 = vsel %vm59_vm0, %v548_v22, 0.0 }
 0x156   :  { %30 = vperm.xlu0 %524, %v22_v25   ;;  %v848_v25 = vpop.xlane.xlu0 %195 }
 0x157   :  { %v203_v30 = vsub.f32 %v756_v46, %v848_v25 }
 0x159   :  { %v206_v2 = vmul.f32 1.442695, %v203_v30 }
 0x15a   :  { %v854_v0 = vpop.xlane.xlu0 %201 }
 0x15b   :  { %549 = vpow2.f32 %v206_v2  ;;  %v96_v2 = vsel %vm35_vm13, %v715_v32, 0.0 }
 0x161   :  { %283 = vadd.xlane.f32.xlu1 %v282_v16  ;;  %v205_v16 = vsub.f32 %v768_v50, %v854_v0 }
 0x163   :  { %v210_v35 = vmul.f32 1.442695, %v205_v16 }
 0x165   :  { %308 = vadd.xlane.f32.xlu1 %v307_v28  ;;  %551 = vpow2.f32 %v210_v35  ;;  %v550_v61 = vpop.eup %549 }
 0x166   :  { %v212_v59 = vsel %vm59_vm0, %v550_v61, 0.0 }
 0x169   :  { %311 = vadd.xlane.f32.xlu1 %v310_v51 }
 0x16d   :  { %407 = vadd.xlane.f32.xlu1 %v406_v57 }
 0x171   :  { %410 = vadd.xlane.f32.xlu1 %v409_v63  ;;  %v552_v63 = vpop.eup %551 }
 0x172   :  { %v218_v4 = vsel %vm59_vm0, %v552_v63, 0.0 }
 0x175   :  { %286 = vadd.xlane.f32.xlu0 %v285_v6  ;;  %82 = vadd.xlane.f32.xlu1 %v81_v13  ;;  %v208_v6 = vmul.f32 1.442695, %v204_v3  ;;  %v447_v13 = vcvt.f32.s32 %v796_v15 }
 0x177   :  { %553 = vpow2.f32 %v208_v6  ;;  %v448_v14 = vshll.u32 %v447_v13, 16 }
 0x179   :  { %79 = vadd.xlane.f32.xlu0 %v78_v17  ;;  %149 = vadd.xlane.f32.xlu1 %v148_v19 }
 0x17d   :  { %146 = vadd.xlane.f32.xlu0 %v145_v21  ;;  %152 = vadd.xlane.f32.xlu1 %v151_v23 }
 0x181   :  { %85 = vadd.xlane.f32.xlu0 %v84_v24  ;;  %v554_v21 = vpop.eup %553 }
 0x1b5   :  { %v331_v38 = vpop.xlane.xlu1 %330 }
 0x1b6   :  { %v332_v26 = vcvt.f32.s32 %v331_v38 }
 0x1b8   :  { %v335_v28 = vadd.s32 %v334_v39, %v332_v26  ;;  %v618_v26 = vmov 0.0  }
 0x1b9   :  { %v346_v43 = vpop.xlane.xlu0 %345  ;;  %v430_v44 = vpop.xlane.xlu1 %429  ;;  %20 = vst.msk [vmem:[#allocation2] sm:$0x1] %vm19_vm1, %v618_v26 }
 0x1ba   :  { %v347_v48 = vcvt.f32.s32 %v346_v43  ;;  %v431_v51 = vcvt.f32.s32 %v430_v44  ;;  %vm351_vm9 = vcmp.eq.s32.totalorder %v668_v10, %v335_v28 }
 0x1bb   :  { %v353_v55 = vsel %vm351_vm9, %v811_v33, 0.0 }
 0x1bc   :  { %v350_v60 = vadd.s32 %v349_v40, %v347_v48  ;;  %v434_v52 = vadd.s32 %v433_v47, %v431_v51  ;;  %v355_v53 = vsel %vm59_vm0, %v353_v55, 0.0 }
 0x1bd   :  { %356 = vadd.xlane.f32.xlu1 %v355_v53  ;;  %v34_v15 = vpop.permute.xlu1 %33 }
 0x1be   :  { %vm352_vm10 = vcmp.eq.s32.totalorder %v668_v10, %v350_v60  ;;  %vm450_vm11 = vcmp.eq.s32.totalorder %v668_v10, %v434_v52  ;;  %vm37_vm15 = vcmp.eq.s32.totalorder %v668_v10, %v34_v15 }
 0x1bf   :  { %v354_v54 = vsel %vm352_vm10, %v837_v62, 0.0  ;;  %v452_v56 = vsel %vm450_vm11, %v811_v33, 0.0  ;;  %v165_v34 = vsel %vm37_vm15, %v742_v41, 0.0  ;;  %v98_v38 = vsel %vm37_vm15, %v747_v42, 0.0 }
 0x1c0   :  { %v358_v57 = vsel %vm59_vm0, %v354_v54, 0.0  ;;  %v454_v58 = vsel %vm59_vm0, %v452_v56, 0.0  ;;  %v172_v32 = vsel %vm59_vm0, %v165_v34, 0.0  ;;  %v105_v39 = vsel %vm59_vm0, %v98_v38, 0.0 }
 0x1c1   :  { %359 = vadd.xlane.f32.xlu1 %v358_v57  ;;  %455 = vadd.xlane.f32.xlu0 %v454_v58  ;;  %v230_v41 = vsel %vm35_vm13, %v756_v46, 0.0 }
 0x1c2   :  { %v233_v5 = vsel %vm59_vm0, %v230_v41, 0.0 }
 0x1c5   :  { %213 = vadd.xlane.f32.xlu0 %v212_v59 }
 0x1c9   :  { %219 = vadd.xlane.f32.xlu0 %v218_v4 }
 0x1cd   :  { %v445_v33 = vpop.xlane.xlu0 %444 }
 0x1ce   :  { %v446_v17 = vcvt.f32.s32 %v445_v33 }
 0x1d0   :  { %v449_v18 = vadd.s32 %v448_v14, %v446_v17 }
 0x1d2   :  { %vm451_vm12 = vcmp.eq.s32.totalorder %v668_v10, %v449_v18 }
 0x1d3   :  { %v453_v19 = vsel %vm451_vm12, %v837_v62, 0.0  ;;  %v215_v62 = vsel %vm59_vm0, %v554_v21, 0.0 }
 0x1d4   :  { %v457_v20 = vsel %vm59_vm0, %v453_v19, 0.0 }
 0x1d5   :  { %v31_v22 = vpop.permute.xlu0 %30  ;;  %458 = vadd.xlane.f32.xlu1 %v457_v20 }
 0x1d6   :  { %vm36_vm14 = vcmp.eq.s32.totalorder %v668_v10, %v31_v22 }
 0x1d7   :  { %v97_v23 = vsel %vm36_vm14, %v710_v31, 0.0  ;;  %v164_v24 = vsel %vm36_vm14, %v727_v36, 0.0  ;;  %v99_v31 = vsel %vm59_vm0, %v96_v2, 0.0  ;;  %v163_v36 = vsel %vm35_vm13, %v732_v37, 0.0 }
 0x1d8   :  { %v102_v30 = vsel %vm59_vm0, %v97_v23, 0.0  ;;  %v169_v16 = vsel %vm59_vm0, %v164_v24, 0.0  ;;  %v166_v1 = vsel %vm59_vm0, %v163_v36, 0.0  ;;  %v231_v35 = vsel %vm36_vm14, %v763_v49, 0.0 }
 0x1d9   :  { %216 = vadd.xlane.f32.xlu1 %v215_v62  ;;  %103 = vadd.xlane.f32.xlu0 %v102_v30  ;;  %v236_v37 = vsel %vm59_vm0, %v231_v35, 0.0  ;;  %v232_v49 = vsel %vm37_vm15, %v768_v50, 0.0 }
 0x1da   :  { %v239_v42 = vsel %vm59_vm0, %v232_v49, 0.0 }
 0x1dd   :  { %100 = vadd.xlane.f32.xlu1 %v99_v31  ;;  %170 = vadd.xlane.f32.xlu0 %v169_v16 }
 0x1e1   :  { %167 = vadd.xlane.f32.xlu1 %v166_v1  ;;  %173 = vadd.xlane.f32.xlu0 %v172_v32 }
 0x1e5   :  { %237 = vadd.xlane.f32.xlu0 %v236_v37  ;;  %106 = vadd.xlane.f32.xlu1 %v105_v39 }
 0x1e9   :  { %234 = vadd.xlane.f32.xlu1 %v233_v5 }
 0x1ed   :  { %240 = vadd.xlane.f32.xlu1 %v239_v42 }
 0x1ee   :  { %v284_v28 = vpop.xlane.xlu1 %283 }
 0x1ef   :  { %555 = vrcp.f32 %v284_v28 }
 0x1f2   :  { %v309_v40 = vpop.xlane.xlu1 %308 }
 0x1f3   :  { %557 = vrcp.f32 %v309_v40 }
 0x1f6   :  { %v312_v43 = vpop.xlane.xlu1 %311 }
 0x1f7   :  { %559 = vrcp.f32 %v312_v43 }
 0x1f9   :  { %v556_v55 = vpop.eup %555 }
 0x1fa   :  { %v408_v44 = vpop.xlane.xlu1 %407 }
 0x1fd   :  { %v558_v53 = vpop.eup %557 }
 0x1fe   :  { %v411_v11 = vpop.xlane.xlu1 %410  ;;  %v367_v63 = vsub.f32 1.0, %v558_v53 }
 0x201   :  { %v560_v61 = vpop.eup %559 }
 0x202   :  { %v83_v46 = vpop.xlane.xlu1 %82  ;;  %v287_v47 = vpop.xlane.xlu0 %286  ;;  %v368_v4 = vsub.f32 1.0, %v560_v61 }
 0x203   :  { %561 = vrcp.f32 %v287_v47 }
 0x204   :  { %563 = vrcp.f32 %v408_v44 }
 0x205   :  { %565 = vrcp.f32 %v411_v11 }
 0x206   :  { %v150_v48 = vpop.xlane.xlu1 %149  ;;  %v80_v51 = vpop.xlane.xlu0 %79  ;;  %567 = vlog2.f32 %v83_v46 }
 0x207   :  { %569 = vlog2.f32 %v80_v51 }
 0x208   :  { %571 = vlog2.f32 %v150_v48 }
 0x20a   :  { %v153_v10 = vpop.xlane.xlu1 %152  ;;  %v147_v50 = vpop.xlane.xlu0 %146 }
 0x20d   :  { %v562_v56 = vpop.eup %561 }
 0x20e   :  { %v86_v57 = vpop.xlane.xlu0 %85  ;;  %v564_v23 = vpop.eup %563 }
 0x20f   :  { %v466_v30 = vsub.f32 1.0, %v564_v23  ;;  %v566_v16 = vpop.eup %565 }
 0x210   :  { %v568_v36 = vpop.eup %567  ;;  %v467_v41 = vsub.f32 1.0, %v566_v16 }
 0x211   :  { %v570_v32 = vpop.eup %569 }
 0x212   :  { %v572_v38 = vpop.eup %571  ;;  %v88_v11 = vmul.f32 0.6931472, %v570_v32 }
 0x213   :  { %v157_v48 = vmul.f32 0.6931472, %v572_v38 }
 0x24a   :  { %v357_v60 = vpop.xlane.xlu1 %356 }
 0x24b   :  { %v361_v52 = vmul.f32 %v556_v55, %v357_v60 }
 0x24d   :  { %v363_v54 = vsub.f32 1.0, %v361_v52  ;;  %v369_v33 = vmul.f32 %v367_v63, %v361_v52 }
 0x24e   :  { %v360_v58 = vpop.xlane.xlu1 %359  ;;  %v456_v13 = vpop.xlane.xlu0 %455 }
 0x24f   :  { %v362_v59 = vmul.f32 %v562_v56, %v360_v58  ;;  %v365_v3 = vmul.f32 %v558_v53, %v363_v54  ;;  %v460_v19 = vmul.f32 %v556_v55, %v456_v13  ;;  %v93_v58 = vadd.f32 %v88_v11, %v809_v27 }
 0x251   :  { %v364_v6 = vsub.f32 1.0, %v362_v59  ;;  %v370_v17 = vmul.f32 %v368_v4, %v362_v59  ;;  %v371_v18 = vadd.f32 %v369_v33, %v365_v3  ;;  %v462_v15 = vsub.f32 1.0, %v460_v19 }
 0x252   :  { %v214_v24 = vpop.xlane.xlu0 %213  ;;  %v468_v2 = vmul.f32 %v466_v30, %v460_v19 }
 0x253   :  { %v366_v14 = vmul.f32 %v560_v61, %v364_v6  ;;  %v373_v22 = vadd.f32 1e-09, %v371_v18  ;;  %v464_v62 = vmul.f32 %v564_v23, %v462_v15 }
 0x255   :  { %v372_v20 = vadd.f32 %v370_v17, %v366_v14  ;;  %v470_v31 = vadd.f32 %v468_v2, %v464_v62 }
 0x256   :  { %v220_v34 = vpop.xlane.xlu0 %219 }
 0x257   :  { %v374_v21 = vadd.f32 1e-09, %v372_v20  ;;  %v472_v39 = vadd.f32 1e-09, %v470_v31 }
 0x259   :  { %573 = vlog2.f32 %v374_v21 }
 0x25a   :  { %575 = vlog2.f32 %v147_v50  ;;  %v90_v50 = vmul.f32 0.6931472, %v568_v36 }
 0x25b   :  { %577 = vlog2.f32 %v373_v22 }
 0x25c   :  { %579 = vlog2.f32 %v153_v10  ;;  %v94_v4 = vadd.f32 %v90_v50, %v787_v7 }
 0x25d   :  { %581 = vlog2.f32 %v86_v57  ;;  %v161_v57 = vadd.f32 %v157_v48, %v789_v8 }
 0x25e   :  { %583 = vlog2.f32 %v214_v24 }
 0x262   :  { %v459_v1 = vpop.xlane.xlu1 %458 }
 0x263   :  { %v461_v35 = vmul.f32 %v562_v56, %v459_v1  ;;  %v574_v37 = vpop.eup %573 }
 0x264   :  { %v576_v49 = vpop.eup %575  ;;  %v378_v46 = vmul.f32 0.6931472, %v574_v37 }
 0x265   :  { %v463_v5 = vsub.f32 1.0, %v461_v35  ;;  %v578_v28 = vpop.eup %577  ;;  %v469_v43 = vmul.f32 %v467_v41, %v461_v35  ;;  %v155_v51 = vmul.f32 0.6931472, %v576_v49 }
 0x266   :  { %v104_v42 = vpop.xlane.xlu0 %103  ;;  %v217_v26 = vpop.xlane.xlu1 %216  ;;  %v376_v55 = vmul.f32 0.6931472, %v578_v28  ;;  %v380_v56 = vsub.f32 0.0, %v378_v46 }
 0x267   :  { %v465_v40 = vmul.f32 %v566_v16, %v463_v5  ;;  %585 = vlog2.f32 %v217_v26  ;;  %v580_v44 = vpop.eup %579  ;;  %v160_v59 = vadd.f32 %v155_v51, %v820_v12  ;;  %v109_v22 = vsub.f32 %v94_v4, %v104_v42 }
 0x268   :  { %587 = vlog2.f32 %v220_v34  ;;  %v582_v47 = vpop.eup %581  ;;  %v159_v53 = vmul.f32 0.6931472, %v580_v44  ;;  %v379_v3 = vsub.f32 0.0, %v376_v55 }
 0x269   :  { %589 = vlog2.f32 %v472_v39  ;;  %v471_v10 = vadd.f32 %v469_v43, %v465_v40  ;;  %v92_v54 = vmul.f32 0.6931472, %v582_v47  ;;  %v584_v63 = vpop.eup %583 }
 0x26a   :  { %v171_v60 = vpop.xlane.xlu0 %170  ;;  %v101_v52 = vpop.xlane.xlu1 %100  ;;  %v162_v17 = vadd.f32 %v159_v53, %v791_v9  ;;  %v383_v19 = vadd.f32 %v380_v56, %v379_v3  ;;  %v222_v8 = vmul.f32 0.6931472, %v584_v63 }
 0x26b   :  { %v473_v61 = vadd.f32 1e-09, %v471_v10  ;;  %v176_v33 = vsub.f32 %v161_v57, %v171_v60  ;;  %v108_v14 = vsub.f32 %v93_v58, %v101_v52  ;;  %v95_v20 = vadd.f32 %v92_v54, %v829_v45 }
 0x26c   :  { %v384_v16 = vrot.slane %v383_v19, 4  ;;  %v227_v45 = vadd.f32 %v222_v8, %v848_v25 }
 0x26d   :  { %591 = vlog2.f32 %v473_v61  ;;  %v114_v7 = vadd.f32 %v109_v22, %v108_v14  ;;  %v491_v22 = vld [vmem:[#allocation2] sm:$0x1] }
 0x26e   :  { %v174_v6 = vpop.xlane.xlu0 %173  ;;  %v168_v13 = vpop.xlane.xlu1 %167  ;;  %v385_v49 = vadd.f32 %v384_v16, %v383_v19 }
 0x26f   :  { %v175_v18 = vsub.f32 %v160_v59, %v168_v13  ;;  %v177_v27 = vsub.f32 %v162_v17, %v174_v6 }
 0x270   :  { %v386_v47 = vrot.slane %v385_v49, 2 }
 0x271   :  { %v586_v21 = vpop.eup %585  ;;  %v181_v15 = vadd.f32 %v176_v33, %v175_v18 }
 0x272   :  { %v588_v12 = vpop.eup %587  ;;  %v224_v23 = vmul.f32 0.6931472, %v586_v21  ;;  %v107_v24 = vpop.xlane.xlu1 %106  ;;  %v387_v52 = vadd.f32 %v386_v47, %v385_v49 }
 0x273   :  { %v590_v62 = vpop.eup %589  ;;  %v182_v30 = vadd.f32 %v181_v15, %v177_v27  ;;  %v110_v2 = vsub.f32 %v95_v20, %v107_v24  ;;  %v226_v9 = vmul.f32 0.6931472, %v588_v12  ;;  %v238_v32 = vpop.xlane.xlu0 %237 }
 0x274   :  { %v228_v31 = vadd.f32 %v224_v23, %v850_v29  ;;  %v475_v1 = vmul.f32 0.6931472, %v590_v62  ;;  %v388_v59 = vrot.slane %v387_v52, 1 }
 0x275   :  { %v183_v36 = vrot.slane %v182_v30, 4  ;;  %v115_v34 = vadd.f32 %v114_v7, %v110_v2  ;;  %v229_v28 = vadd.f32 %v226_v9, %v854_v0 }
 0x276   :  { %v235_v35 = vpop.xlane.xlu1 %234  ;;  %v243_v39 = vsub.f32 %v228_v31, %v238_v32  ;;  %v478_v40 = vsub.f32 0.0, %v475_v1  ;;  %v389_v33 = vadd.f32 %v388_v59, %v387_v52 }
 0x277   :  { %v592_v38 = vpop.eup %591  ;;  %v184_v37 = vadd.f32 %v183_v36, %v182_v30  ;;  %v116_v41 = vrot.slane %v115_v34, 4  ;;  %v242_v5 = vsub.f32 %v227_v45, %v235_v35 }
 0x278   :  { %v477_v42 = vmul.f32 0.6931472, %v592_v38 }
 0x279   :  { %v117_v26 = vadd.f32 %v116_v41, %v115_v34  ;;  %v185_v44 = vrot.slane %v184_v37, 2  ;;  %v248_v46 = vadd.f32 %v243_v39, %v242_v5 }
 0x27a   :  { %v479_v29 = vsub.f32 0.0, %v477_v42  ;;  %v241_v43 = vpop.xlane.xlu1 %240 }
 0x27b   :  { %v118_v11 = vrot.slane %v117_v26, 2  ;;  %v244_v25 = vsub.f32 %v229_v28, %v241_v43  ;;  %v186_v55 = vadd.f32 %v185_v44, %v184_v37 }
 0x27c   :  { %v482_v48 = vadd.f32 %v479_v29, %v478_v40 }
 0x27d   :  { %v119_v51 = vadd.f32 %v118_v11, %v117_v26  ;;  %v249_v10 = vadd.f32 %v248_v46, %v244_v25  ;;  %v187_v0 = vrot.slane %v186_v55, 1 }
 0x27e   :  { %v483_v50 = vrot.slane %v482_v48, 4 }
 0x27f   :  { %v250_v60 = vrot.slane %v249_v10, 4  ;;  %v120_v61 = vrot.slane %v119_v51, 1  ;;  %v188_v6 = vadd.f32 %v187_v0, %v186_v55 }
 0x280   :  { %v484_v53 = vadd.f32 %v483_v50, %v482_v48 }
 0x281   :  { %v251_v54 = vadd.f32 %v250_v60, %v249_v10  ;;  %v121_v63 = vadd.f32 %v120_v61, %v119_v51 }
 0x282   :  { %v485_v56 = vrot.slane %v484_v53, 2 }
 0x283   :  { %v252_v57 = vrot.slane %v251_v54, 2  ;;  %v189_v17 = vadd.f32 %v188_v6, %v121_v63 }
 0x284   :  { %v486_v58 = vadd.f32 %v485_v56, %v484_v53 }
 0x285   :  { %v253_v3 = vadd.f32 %v252_v57, %v251_v54 }
 0x286   :  { %v487_v4 = vrot.slane %v486_v58, 1 }
 0x287   :  { %v254_v13 = vrot.slane %v253_v3, 1 }
 0x288   :  { %v488_v14 = vadd.f32 %v487_v4, %v486_v58 }
 0x289   :  { %v255_v18 = vadd.f32 %v254_v13, %v253_v3 }
 0x28a   :  { %v489_v19 = vadd.f32 %v488_v14, %v389_v33 }
 0x28b   :  { %v256_v20 = vadd.f32 %v255_v18, %v189_v17 }
 0x28c   :  { %v490_v21 = vmul.f32 0.015625, %v489_v19 }
 0x28d   :  { %v257_v8 = vmul.f32 0.0069444445, %v256_v20 }
 0x28f   :  { %v492_v27 = vadd.f32 %v490_v21, %v257_v8 }
 0x291   :  { %v493_v15 = vadd.f32 %v492_v27, %v491_v22 }
 0x293   :  { %495 = vst.msk [vmem:[#allocation2] sm:$0x1] %vm19_vm1, %v493_v15 }
 0x294   :  { %604 = shalt.err (!%p601_p4)
}
 0x295   :  { %s605_s24 = scalar_lea.hbm %s950_s3, 16 }
 0x296   :  { %p606_p5 = scmp.ne.s32.totalorder %s950_s3, %s605_s24  ;;  %p609_p6 = scmp.lt.u32.totalorder %s605_s24, %s950_s3 }
 0x298   :  { %p611_p7 = pnand %p609_p6, %p606_p5 }
 0x29a   :  { %614 = shalt.err (!%p611_p7)
}
 0x29b   :  { %505 = dma.vmem_to_hbm [thread:$0]  %s503_s19, 16, %s950_s3, [#allocation3]  }
 0x29c   :  { %615 = dma.done.wait [#allocation3], 16  }
 0x29d   :  { %616 = vsyncadd [#allocation3], 4294967280 }
 0x29e   :  { %509 = vsyncpa [#allocation3], 1 }

</bundles_post_ra>
